<compile_context>
chip_gen: v5e
topology: v5e:2x2
jax: 0.10.0
libtpu: 0.0.40
codegen_flags: <defaults>
</compile_context>

<pallas_src>
import functools

import jax
import jax.numpy as jnp
from jax.experimental import pallas as pl
from jax.experimental.pallas import tpu as pltpu

yolov3_config = [
    (32, 3, 1), (64, 3, 2), ['B', 1], (128, 3, 2), ['B', 2], (256, 3, 2),
    ['B', 8], (512, 3, 2), ['B', 8], (1024, 3, 2), ['B', 4], (512, 1, 1),
    (1024, 3, 1), 'S', (256, 1, 1), 'U', (256, 1, 1), (512, 3, 1), 'S',
    (128, 1, 1), 'U', (128, 1, 1), (256, 3, 1), 'S',
]


# ---------------------------------------------------------------------------
# Pallas kernel: K-tiled GEMM with fused affine (+LeakyReLU, +residual add)
# ---------------------------------------------------------------------------
def _gemm_affine_kernel(apply_act, has_skip, *refs):
    if has_skip:
        a_ref, b_ref, scale_ref, bias_ref, skip_ref, o_ref, acc_ref = refs
    else:
        a_ref, b_ref, scale_ref, bias_ref, o_ref, acc_ref = refs
        skip_ref = None

    @pl.when(pl.program_id(2) == 0)
    def _init():
        acc_ref[...] = jnp.zeros_like(acc_ref)

    acc_ref[...] += jnp.dot(a_ref[...], b_ref[...],
                            preferred_element_type=jnp.float32)

    @pl.when(pl.program_id(2) == pl.num_programs(2) - 1)
    def _epilogue():
        y = acc_ref[...] * scale_ref[...] + bias_ref[...]
        if apply_act:
            y = jnp.where(y >= 0.0, y, 0.1 * y)      # LeakyReLU(0.1)
        if has_skip:
            y = y + skip_ref[...].astype(jnp.float32)
        o_ref[...] = y.astype(o_ref.dtype)


def _round_up(x, m):
    return ((x + m - 1) // m) * m


def _pick_tm(M):
    """Output-row tile: 256 for big layers, shrink for the tiny-M tail."""
    if M >= 2048:
        return 256
    if M >= 128:
        return 128
    return _round_up(max(M, 1), 8)     # bounds padded-M MXU waste for M=2..


def _pick_tk(K):
    """K tile: single block for small K (full-dim block is always legal),
    otherwise the largest divisor of K that is a multiple of 128, <= 1152."""
    if K <= 1152:
        return K
    for tk in (1152, 1024, 896, 768, 640, 512, 384, 256, 128):
        if K % tk == 0:
            return tk
    return K


def _vmem_limit_bytes(TM, TN, TK, has_skip, out_dtype):
    """Scoped VMEM request derived from tile sizes + double buffering."""
    out_bpe = jnp.dtype(out_dtype).itemsize
    per_step = (TM * TK * 2        # A tile (bf16)
                + TK * TN * 2      # B tile (bf16)
                + 2 * TN * 4       # scale + bias (f32)
                + TM * TN * out_bpe)
    if has_skip:
        per_step += TM * TN * 2
    est = 2 * per_step + TM * TN * 4   # double buffering + f32 accumulator
    # Generous headroom for compiler-internal scratch, but always < 64 MiB
    # so the request is valid on v7x (and never oversized on v5e/v6e).
    return int(min(48 * 1024 * 1024, max(2 * est + (8 << 20), 16 << 20)))


def fused_conv_gemm(a, b, scale, bias, *, apply_act, skip=None,
                    out_dtype=jnp.bfloat16):
    """a: (M, K) im2col patches, b: (K, Nc) weights, scale/bias: (Nc,).
    Optional skip: (M, Nc) residual input added after the activation."""
    M, K = a.shape
    K2, Nc = b.shape
    assert K == K2

    # bf16 operands for the MXU; epilogue math stays f32.
    a = a.astype(jnp.bfloat16)
    b = b.astype(jnp.bfloat16)
    scale = scale.astype(jnp.float32)
    bias = bias.astype(jnp.float32)

    # Lane-dense output: pad Cout to a multiple of 128 (sliced off below).
    Ncp = _round_up(Nc, 128)
    if Ncp != Nc:
        b = jnp.pad(b, ((0, 0), (0, Ncp - Nc)))
        scale = jnp.pad(scale, (0, Ncp - Nc))
        bias = jnp.pad(bias, (0, Ncp - Nc))

    TM = _pick_tm(M)
    Mp = _round_up(M, TM)
    if Mp != M:
        a = jnp.pad(a, ((0, Mp - M), (0, 0)))

    has_skip = skip is not None
    if has_skip:
        skip = skip.astype(jnp.bfloat16)
        if Mp != M or Ncp != Nc:
            skip = jnp.pad(skip, ((0, Mp - M), (0, Ncp - Nc)))

    TK = _pick_tk(K)
    TN = min(Ncp, 256)
    while Ncp % TN != 0:
        TN -= 128
    # Keep >= 2 parallel blocks when the M axis collapses (dual-TC chips).
    if Mp // TM == 1 and Ncp // TN == 1 and Ncp >= 256:
        TN = 128

    grid = (Ncp // TN, Mp // TM, K // TK)   # (j, i, k); k innermost reduction

    in_specs = [
        pl.BlockSpec((TM, TK), lambda j, i, k: (i, k)),
        pl.BlockSpec((TK, TN), lambda j, i, k: (k, j)),
        pl.BlockSpec((1, TN), lambda j, i, k: (0, j)),
        pl.BlockSpec((1, TN), lambda j, i, k: (0, j)),
    ]
    inputs = [a, b, scale.reshape(1, Ncp), bias.reshape(1, Ncp)]
    if has_skip:
        in_specs.append(pl.BlockSpec((TM, TN), lambda j, i, k: (i, j)))
        inputs.append(skip)

    kernel = functools.partial(_gemm_affine_kernel, apply_act, has_skip)

    out = pl.pallas_call(
        kernel,
        out_shape=jax.ShapeDtypeStruct((Mp, Ncp), out_dtype),
        grid_spec=pltpu.PrefetchScalarGridSpec(
            num_scalar_prefetch=0,
            grid=grid,
            in_specs=in_specs,
            out_specs=pl.BlockSpec((TM, TN), lambda j, i, k: (i, j)),
            scratch_shapes=[pltpu.VMEM((TM, TN), jnp.float32)],
        ),
        compiler_params=pltpu.CompilerParams(
            dimension_semantics=("parallel", "parallel", "arbitrary"),
            vmem_limit_bytes=_vmem_limit_bytes(TM, TN, TK, has_skip, out_dtype),
        ),
    )(*inputs)

    if Mp != M or Ncp != Nc:
        out = out[:M, :Nc]
    return out


# ---------------------------------------------------------------------------
# im2col (plain-JAX glue) and layer runners
# ---------------------------------------------------------------------------
def im2col(x, k, s, p):
    n, h, w, c = x.shape
    if p > 0:
        x = jnp.pad(x, ((0, 0), (p, p), (p, p), (0, 0)))
    ho = (h + 2 * p - k) // s + 1
    wo = (w + 2 * p - k) // s + 1
    cols = []
    for kh in range(k):
        for kw in range(k):
            cols.append(x[:, kh:kh + s * (ho - 1) + 1:s,
                           kw:kw + s * (wo - 1) + 1:s, :])
    patches = jnp.stack(cols, axis=3)               # (n, ho, wo, k*k, c)
    return patches.reshape(n * ho * wo, k * k * c), n, ho, wo


def run_cnn_block(blk, x, skip=None, out_dtype=jnp.bfloat16):
    if blk["k"] == 1 and blk["s"] == 1 and blk["p"] == 0:
        n, h, w, c = x.shape                        # 1x1 conv: pure reshape
        a, ho, wo = x.reshape(n * h * w, c), h, w
    else:
        a, n, ho, wo = im2col(x, blk["k"], blk["s"], blk["p"])
    w2d = blk["w"].reshape(blk["k"] * blk["k"] * blk["cin"], blk["cout"])
    skip2d = None
    if skip is not None:
        skip2d = skip.reshape(-1, skip.shape[-1])
    y = fused_conv_gemm(a, w2d, blk["scale"], blk["bias"],
                        apply_act=blk["act"], skip=skip2d, out_dtype=out_dtype)
    return y.reshape(n, ho, wo, blk["cout"])


def run_residual(blk, x):
    for c1, c2 in blk["layers"]:
        h = run_cnn_block(c1, x)
        if blk["use_residual"]:
            x = run_cnn_block(c2, h, skip=x)        # skip-add fused in kernel
        else:
            x = run_cnn_block(c2, h)
    return x


def run_scale_prediction(blk, x):
    h = run_cnn_block(blk["c1"], x)
    y = run_cnn_block(blk["c2"], h, out_dtype=jnp.float32)  # head stays f32
    n, hh, ww, _ = y.shape
    nc = blk["num_classes"]
    # torch: (n, 3*(nc+5), h, w) -> (n, 3, nc+5, h, w) -> permute(0,1,3,4,2)
    return y.reshape(n, hh, ww, 3, nc + 5).transpose(0, 3, 1, 2, 4)


# ---------------------------------------------------------------------------
# Deterministic parameter construction
# ---------------------------------------------------------------------------
class ParamGen:
    def __init__(self, key):
        self.key = key
        self.count = 0

    def _next_key(self):
        self.count += 1
        return jax.random.fold_in(self.key, self.count)

    def normal(self, shape, std):
        return std * jax.random.normal(self._next_key(), shape, dtype=jnp.float32)


def make_cnn_block(pg, cin, cout, k, stride, pad, bn_act=True):
    fan_in = k * k * cin
    w = pg.normal((k, k, cin, cout), (2.0 / fan_in) ** 0.5)
    if bn_act:
        # BatchNorm evaluated with running statistics (mean=0, var=1), folded
        # into a per-channel scale/bias applied in the kernel epilogue.
        # TODO(synk): training-mode BN (batch statistics) is not reproduced;
        # for real trained weights bias = beta - mean*gamma/sqrt(var+eps).
        gamma = 1.0 + pg.normal((cout,), 0.1)
        beta = pg.normal((cout,), 0.1)
        eps = 1e-5
        scale = gamma / jnp.sqrt(jnp.ones((cout,), jnp.float32) + eps)
        bias = beta
    else:
        scale = jnp.ones((cout,), jnp.float32)
        bias = pg.normal((cout,), 0.01)  # conv bias (bn_act=False => bias=True)
    return dict(type="cnn", w=w, scale=scale, bias=bias, k=k, s=stride, p=pad,
                cin=cin, cout=cout, act=bn_act)


def make_residual_block(pg, channels, use_residual=True, num_repeats=1):
    layers = []
    for _ in range(num_repeats):
        c1 = make_cnn_block(pg, channels, channels // 2, 1, 1, 0)
        c2 = make_cnn_block(pg, channels // 2, channels, 3, 1, 1)
        layers.append((c1, c2))
    return dict(type="residual", layers=layers, use_residual=use_residual,
                num_repeats=num_repeats)


def make_scale_prediction(pg, cin, num_classes):
    c1 = make_cnn_block(pg, cin, 2 * cin, 3, 1, 1)
    c2 = make_cnn_block(pg, 2 * cin, (num_classes + 5) * 3, 1, 1, 0, bn_act=False)
    return dict(type="scale_pred", c1=c1, c2=c2, num_classes=num_classes)


def build_yolov3(pg, in_channels=3, num_classes=20):
    layers = []
    cin = in_channels
    for module in yolov3_config:
        if isinstance(module, tuple):
            cout, k, s = module
            layers.append(make_cnn_block(pg, cin, cout, k, s, 1 if k == 3 else 0))
            cin = cout
        elif isinstance(module, list):
            layers.append(make_residual_block(pg, cin, num_repeats=module[1]))
        elif module == 'S':
            layers.append(make_residual_block(pg, cin, use_residual=False,
                                              num_repeats=1))
            layers.append(make_cnn_block(pg, cin, cin // 2, 1, 1, 0))
            layers.append(make_scale_prediction(pg, cin // 2, num_classes))
            cin = cin // 2
        elif module == 'U':
            layers.append(dict(type="upsample"))
            cin = cin * 3
    return layers


def yolov3_forward(layers, x_nchw):
    # NCHW (torch) -> NHWC (kernel layout), bf16 intermediate activations.
    x = jnp.transpose(x_nchw, (0, 2, 3, 1)).astype(jnp.bfloat16)
    outputs = []
    routes = []
    for blk in layers:
        t = blk["type"]
        if t == "scale_pred":
            outputs.append(run_scale_prediction(blk, x))
            continue
        if t == "cnn":
            x = run_cnn_block(blk, x)
        elif t == "residual":
            x = run_residual(blk, x)
            if blk["num_repeats"] == 8:
                routes.append(x)
        elif t == "upsample":
            x = jnp.repeat(jnp.repeat(x, 2, axis=1), 2, axis=2)  # nearest x2
            x = jnp.concatenate([x, routes[-1]], axis=-1)        # torch dim=1
            routes.pop()
    return outputs


if __name__ == "__main__":
    key = jax.random.PRNGKey(0)
    pg = ParamGen(jax.random.fold_in(key, 1))
    layers = build_yolov3(pg, in_channels=3, num_classes=20)

    # Small input consistent with the module: batch=2, 3 channels, 32x32 spatial
    # (spatial must be divisible by 32 for the 5 stride-2 stages).
    x = jax.random.normal(jax.random.fold_in(key, 2), (2, 3, 32, 32), jnp.float32)

    outs = yolov3_forward(layers, x)
    outs = jax.block_until_ready(outs)

    expected = [(2, 3, 1, 1, 25), (2, 3, 2, 2, 25), (2, 3, 4, 4, 25)]
    got = [tuple(o.shape) for o in outs]
    assert got == expected, f"unexpected output shapes {got}"
    assert all(o.dtype == jnp.float32 for o in outs)
    assert all(bool(jnp.all(jnp.isfinite(o))) for o in outs)
    print("KERNEL_OK")
</pallas_src>

<mosaic_0001>
module attributes {stable_mosaic.version = 11 : i64} {
  func.func @_gemm_affine_kernel(%arg0: i32, %arg1: i32, %arg2: i32, %arg3: memref<256x27xbf16, #tpu.memory_space<vmem>>, %arg4: memref<27x128xbf16, #tpu.memory_space<vmem>>, %arg5: memref<1x128xf32, #tpu.memory_space<vmem>>, %arg6: memref<1x128xf32, #tpu.memory_space<vmem>>, %arg7: memref<256x128xbf16, #tpu.memory_space<vmem>>, %arg8: memref<256x128xf32, #tpu.memory_space<vmem>>) attributes {dimension_semantics = [#tpu.dimension_semantics<parallel>, #tpu.dimension_semantics<parallel>, #tpu.dimension_semantics<arbitrary>], iteration_bounds = array<i64: 1, 8, 1>, scalar_prefetch = 0 : i64, scratch_operands = 1 : i64, tpu.core_type = #tpu.core_type<tc>, window_params = [{transform_indices = @transform_0, window_bounds = array<i64: 256, 27>}, {transform_indices = @transform_1, window_bounds = array<i64: 27, 128>}, {transform_indices = @transform_2, window_bounds = array<i64: 1, 128>}, {transform_indices = @transform_3, window_bounds = array<i64: 1, 128>}, {transform_indices = @transform_4, window_bounds = array<i64: 256, 128>}]} {
    %c0_i32 = arith.constant 0 : i32
    %0 = arith.cmpi eq, %arg2, %c0_i32 : i32
    %1 = arith.extui %0 : i1 to i32
    %c0_i32_0 = arith.constant 0 : i32
    %2 = arith.cmpi ne, %1, %c0_i32_0 : i32
    scf.if %2 {
      %cst_10 = arith.constant 0.000000e+00 : f32
      %12 = vector.broadcast %cst_10 : f32 to vector<256x128xf32>
      %c0_11 = arith.constant 0 : index
      %c0_12 = arith.constant 0 : index
      %13 = vector.load %arg8[%c0_11, %c0_12] : memref<256x128xf32, #tpu.memory_space<vmem>>, vector<256x128xf32>
      tpu.vector_store %arg8[%c0_11, %c0_12], %12 {strides = array<i32>} : memref<256x128xf32, #tpu.memory_space<vmem>>, vector<256x128xf32>,
    } else {
    }
    %c0 = arith.constant 0 : index
    %c0_1 = arith.constant 0 : index
    %3 = vector.load %arg8[%c0, %c0_1] : memref<256x128xf32, #tpu.memory_space<vmem>>, vector<256x128xf32>
    %c0_2 = arith.constant 0 : index
    %c0_3 = arith.constant 0 : index
    %4 = vector.load %arg3[%c0_2, %c0_3] : memref<256x27xbf16, #tpu.memory_space<vmem>>, vector<256x27xbf16>
    %c0_4 = arith.constant 0 : index
    %c0_5 = arith.constant 0 : index
    %5 = vector.load %arg4[%c0_4, %c0_5] : memref<27x128xbf16, #tpu.memory_space<vmem>>, vector<27x128xbf16>
    %cst = arith.constant dense<0.000000e+00> : vector<256x128xf32>
    %6 = tpu.matmul %4, %5, %cst {dimension_numbers = #tpu.dot_dimension_numbers<[1], [0], [0], [1], [0, 0, 1, 1], [], []>} : vector<256x27xbf16>, vector<27x128xbf16>, vector<256x128xf32> -> vector<256x128xf32>
    %7 = arith.addf %3, %6 : vector<256x128xf32>
    %c0_6 = arith.constant 0 : index
    %c0_7 = arith.constant 0 : index
    %8 = vector.load %arg8[%c0_6, %c0_7] : memref<256x128xf32, #tpu.memory_space<vmem>>, vector<256x128xf32>
    tpu.vector_store %arg8[%c0_6, %c0_7], %7 {strides = array<i32>} : memref<256x128xf32, #tpu.memory_space<vmem>>, vector<256x128xf32>,
    %c0_i32_8 = arith.constant 0 : i32
    %9 = arith.cmpi eq, %arg2, %c0_i32_8 : i32
    %10 = arith.extui %9 : i1 to i32
    %c0_i32_9 = arith.constant 0 : i32
    %11 = arith.cmpi ne, %10, %c0_i32_9 : i32
    scf.if %11 {
      %c0_10 = arith.constant 0 : index
      %c0_11 = arith.constant 0 : index
      %12 = vector.load %arg8[%c0_10, %c0_11] : memref<256x128xf32, #tpu.memory_space<vmem>>, vector<256x128xf32>
      %c0_12 = arith.constant 0 : index
      %c0_13 = arith.constant 0 : index
      %13 = vector.load %arg5[%c0_12, %c0_13] : memref<1x128xf32, #tpu.memory_space<vmem>>, vector<1x128xf32>
      %14 = vector.broadcast %13 : vector<1x128xf32> to vector<256x128xf32>
      %15 = arith.mulf %12, %14 : vector<256x128xf32>
      %c0_14 = arith.constant 0 : index
      %c0_15 = arith.constant 0 : index
      %16 = vector.load %arg6[%c0_14, %c0_15] : memref<1x128xf32, #tpu.memory_space<vmem>>, vector<1x128xf32>
      %17 = vector.broadcast %16 : vector<1x128xf32> to vector<256x128xf32>
      %18 = arith.addf %15, %17 : vector<256x128xf32>
      %cst_16 = arith.constant 0.000000e+00 : f32
      %19 = vector.broadcast %cst_16 : f32 to vector<256x128xf32>
      %20 = arith.cmpf oge, %18, %19 : vector<256x128xf32>
      %cst_17 = arith.constant 1.000000e-01 : f32
      %21 = vector.broadcast %cst_17 : f32 to vector<256x128xf32>
      %22 = arith.mulf %21, %18 : vector<256x128xf32>
      %23 = arith.select %20, %18, %22 : vector<256x128xi1>, vector<256x128xf32>
      %24 = arith.truncf %23 : vector<256x128xf32> to vector<256x128xbf16>
      %c0_18 = arith.constant 0 : index
      %c0_19 = arith.constant 0 : index
      %25 = vector.load %arg7[%c0_18, %c0_19] : memref<256x128xbf16, #tpu.memory_space<vmem>>, vector<256x128xbf16>
      tpu.vector_store %arg7[%c0_18, %c0_19], %24 {strides = array<i32>} : memref<256x128xbf16, #tpu.memory_space<vmem>>, vector<256x128xbf16>,
    } else {
    }
    return
  }
  func.func @transform_0(%arg0: i32, %arg1: i32, %arg2: i32) -> (i32, i32) {
    %c0_i32 = arith.constant 0 : i32
    return %arg1, %arg2 : i32, i32
  }
  func.func @transform_1(%arg0: i32, %arg1: i32, %arg2: i32) -> (i32, i32) {
    %c0_i32 = arith.constant 0 : i32
    return %arg2, %arg0 : i32, i32
  }
  func.func @transform_2(%arg0: i32, %arg1: i32, %arg2: i32) -> (i32, i32) {
    %c0_i32 = arith.constant 0 : i32
    %c0_i32_0 = arith.constant 0 : i32
    return %c0_i32, %arg0 : i32, i32
  }
  func.func @transform_3(%arg0: i32, %arg1: i32, %arg2: i32) -> (i32, i32) {
    %c0_i32 = arith.constant 0 : i32
    %c0_i32_0 = arith.constant 0 : i32
    return %c0_i32, %arg0 : i32, i32
  }
  func.func @transform_4(%arg0: i32, %arg1: i32, %arg2: i32) -> (i32, i32) {
    %c0_i32 = arith.constant 0 : i32
    return %arg1, %arg0 : i32, i32
  }
}

</mosaic_0001>

<bundles_post_ra>
// kernel: tpu_custom_call.1
= control target key start
LH: loop header
LB: loop body
LE: loop exit
PB: predicated region body
PF: predicated region fallthrough
CT: control target
= control target key end

     0   :  { %9 = vsyncpa [#allocation4], 0  ;;  %s1729_s0 = inlined_call_operand.vmem [shape: bf16[2048,27], index: 0, kind: input, shape index: {}]   ;;  %s1730_s1 = inlined_call_operand.vmem [shape: bf16[27,128], index: 1, kind: input, shape index: {}]   ;;  %s1731_s2 = inlined_call_operand.vmem [shape: f32[1,128], index: 2, kind: input, shape index: {}]   ;;  %s1732_s3 = inlined_call_operand.vmem [shape: f32[1,128], index: 3, kind: input, shape index: {}]   ;;  %s1733_s4 = inlined_call_operand.hbm [shape: bf16[2048,128], index: 4, kind: output, shape index: {}]  }
   0x1   :  { %11 = vsyncpa [#allocation4 + $0x1], 0  ;;  %s1493_s15 = smov 0   ;;  %s1495_s16 = smov 0  }
   0x2   :  { %s1497_s17 = smov 0   ;;  %s1499_s18 = smov 0  }
   0x3   :  { %s1501_s19 = smov 0   ;;  %s1503_s20 = smov 0  }
   0x4 LB: > { %s1101_s21 = sadd.s32 4294967295, %s1463_s20   ;;  %s1102_s22 = sadd.s32 4294967294, %s1463_s20   ;;  %s1463_s20 = sphi %s1503_s20, %s17_s20   ;;  %s1459_s19 = sphi %s1501_s19, %s1740_s19   ;;  %s1455_s18 = sphi %s1499_s18, %s1739_s18   ;;  %s1451_s17 = sphi %s1497_s17, %s1738_s17   ;;  %s1447_s16 = sphi %s1495_s16, %s1737_s16   ;;  %s1443_s15 = sphi %s1493_s15, %s1736_s15  }
   0x5   : > { %s32_s23 = sadd.s32 1, %s1459_s19  ;;  %s153_s24 = sadd.s32 1, %s1451_s17 }
   0x6   : > { %p34_p0 = scmp.ge.s32.totalorder %s32_s23, 8  ;;  %p163_p1 = scmp.ne.s32.totalorder %s1451_s17, %s1447_s16 }
   0x7   : > { %p164_p2 = scmp.eq.s32.totalorder %s1101_s21, 7  ;;  %p169_p3 = scmp.ne.s32.totalorder %s1447_s16, %s1443_s15 }
   0x8   : > { %s1742_s23 = smov (%p34_p0, %s32_s23), 0  ;;  %p170_p5 = scmp.eq.s32.totalorder %s1102_s22, 7 }
   0x9   : > { %p1533_p4 = por %p164_p2, %p163_p1  ;;  %s148_s26 = ssub.s32 %s1459_s19, %s1742_s23 }
   0xa   : > { %p1108_p6 = scmp.ge.s32.totalorder %s1463_s20, 1  ;;  %p151_p7 = scmp.eq.s32.totalorder %s148_s26, 0 }
   0xb   : > { %p1540_p8 = por %p170_p5, %p169_p3  ;;  %p224_p9 = scmp.lt.s32.totalorder %s1463_s20, 9 }
   0xc   : > { %s1546_s28 = scalar_select %p151_p7, %s1451_s17, %s153_s24  }
   0xd   : > { %p225_p10 = pnand %p1108_p6, %p224_p9 }
   0xe   : > { %s1110_s7 = sshll.u32 (!%p225_p10), %s1455_s18, 5  ;;  %s264_s26 = sand.u32 (!%p225_p10), 1, %s1447_s16  }
   0xf   : > { %228 = sbr.rel (%p225_p10) target bundleno = 236 (0xec), region = 36  ;;  %p268_p11 = scmp.lt.s32.totalorder (!%p225_p10), %s1110_s7, 255 }
  0x10   : > { %s1109_s29 = sshll.u32 (!%p225_p10), %s264_s26, 7  ;;  %s1223_s5 = sshll.u32 (!%p225_p10), %s1455_s18, 7 }
  0x11   : > { %s1622_s30 = scalar_lea.vmem (!%p225_p10), [#allocation3], %s1109_s29  ;;  %s1405_s21 = scalar_lea.hbm (!%p225_p10), %s1733_s4, 1024 }
  0x12   : > { %s978_s8 = sshll.u32 (!%p225_p10), %s1622_s30, 4  ;;  %s979_s8 = int_to_ptr.vmem [resolvable:$true] %s978_s8 }
  0x14   : > { %v1182_v0 = vld [vmem:[%s1730_s1 + $0x8] sm:$0xf]  ;;  %v1222_v1 = vld [vmem:[%s1730_s1 + $0x8] sm:$0x30]  ;;  %vm537_vm0 = vcmask 1044480   ;;  %vm538_vm1 = vcmask 1045504  }
  0x15   : > { %v1183_v2 = vor.u32 %v1222_v1, %v1182_v0  ;;  %v1465_v3 = vmov 65535   ;;  %s1744_s7 = smov (!%p268_p11, %s1110_s7), 255  ;;  %v1221_v7 = vld [vmem:[%s1730_s1] sm:$0xff]  ;;  %vm488_vm2 = vcmask 220160  }
  0x16   : > { %v539_v4 = vsel %vm537_vm0, 4294967295, %v1465_v3  ;;  %s1111_s10 = sshll.u32 %s1744_s7, 2  ;;  %v1598_v24 = vld [vmem:[%s1731_s2] ss:$0 sm:$0xff]  ;;  %s977_s7 = scalar_lea.hbm %s1733_s4, %s1223_s5 }
  0x17   : > { %v540_v5 = vsel %vm538_vm1, %v539_v4, 0  ;;  %s1561_s13 = scalar_lea.vmem %s1729_s0, %s1111_s10  ;;  %v1604_v28 = vld [vmem:[%s1732_s3] ss:$0 sm:$0xff]  ;;  %s980_s9 = sshll.u32 %s977_s7, 4  ;;  %s981_s9 = int_to_ptr.hbm [resolvable:$true] %s980_s9 }
  0x18   : > { %v542_v6 = vand.u32 %v1183_v2, %v540_v5  ;;  %v1205_v8 = vld [vmem:[%s1561_s13] sm:$0xff]  ;;  %v1206_v12 = vld [vmem:[%s1561_s13 + $0x8] sm:$0xff]  ;;  %v1207_v16 = vld [vmem:[%s1561_s13 + $0x10] sm:$0xff]  ;;  %s965_s10 = scalar_lea.sflag [#allocation4], %s264_s26  ;;  %s1399_s11 = sshra.s32 %s981_s9, 4  ;;  %s1400_s11 = int_to_ptr.hbm [resolvable:$true] %s1399_s11 }
  0x19   : > { %v1209_v9 = vld [vmem:[%s1561_s13 + $0x20] sm:$0xff]  ;;  %v1210_v13 = vld [vmem:[%s1561_s13 + $0x28] sm:$0xff]  ;;  %v1211_v17 = vld [vmem:[%s1561_s13 + $0x30] sm:$0xff]  ;;  %s1401_s12 = scalar_lea.hbm %s1400_s11, 128  ;;  %p1406_p1 = scmp.lt.s32.totalorder %s1400_s11, %s1733_s4 }
  0x1a   : > { %550 = vmatpush.bf16.msra.mxu0 %v542_v6  ;;  %1319 = vmatpush.bf16.msra.mxu1 %v542_v6  ;;  %v1213_v10 = vld [vmem:[%s1561_s13 + $0x40] sm:$0xff]  ;;  %v1214_v14 = vld [vmem:[%s1561_s13 + $0x48] sm:$0xff]  ;;  %v1215_v18 = vld [vmem:[%s1561_s13 + $0x50] sm:$0xff]  ;;  %p1402_p12 = scmp.ne.s32.totalorder %s1400_s11, %s1401_s12  ;;  %p1407_p2 = scmp.lt.s32.totalorder %s1405_s21, %s1401_s12 }
  0x1b   : > { %1320 = vmatpush.bf16.msra.mxu2 %v542_v6  ;;  %1321 = vmatpush.bf16.msra.mxu3 %v542_v6  ;;  %v1217_v11 = vld [vmem:[%s1561_s13 + $0x60] sm:$0xff]  ;;  %v1218_v15 = vld [vmem:[%s1561_s13 + $0x68] sm:$0xff]  ;;  %v1219_v19 = vld [vmem:[%s1561_s13 + $0x70] sm:$0xff] }
  0x1c   : > { %v1208_v20 = vld [vmem:[%s1561_s13 + $0x18] sm:$0xff]  ;;  %p1403_p13 = pnand %p1402_p12, %p1533_p4  ;;  %p1408_p3 = por %p1407_p2, %p1406_p1 }
  0x1d   : > { %v1212_v21 = vld [vmem:[%s1561_s13 + $0x38] sm:$0xff] }
  0x1e   : > { %551 = vmatpush.bf16.msra.mxu0 %v1221_v7  ;;  %1322 = vmatpush.bf16.msra.mxu1 %v1221_v7  ;;  %v1216_v22 = vld [vmem:[%s1561_s13 + $0x58] sm:$0xff]  ;;  %p1404_p0 = pneg %p1403_p13 }
  0x1f   : > { %1323 = vmatpush.bf16.msra.mxu2 %v1221_v7  ;;  %1324 = vmatpush.bf16.msra.mxu3 %v1221_v7  ;;  %v1220_v23 = vld [vmem:[%s1561_s13 + $0x78] sm:$0xff] }
  0x20   : > { %p1409_p5 = pnand %p1408_p3, %p1404_p0 }
  0x21   : > { %1184 = vmatmul.msk.bf16.vlgmr.msra.gmra.mxu0 %vm488_vm2, %v1205_v8  ;;  %1188 = vmatmul.msk.bf16.vlgmr.msra.gmra.mxu1 %vm488_vm2, %v1209_v9 }
  0x22   : > { %1192 = vmatmul.msk.bf16.vlgmr.msra.gmra.mxu2 %vm488_vm2, %v1213_v10  ;;  %1196 = vmatmul.msk.bf16.vlgmr.msra.gmra.mxu3 %vm488_vm2, %v1217_v11 }
  0x31   : > { %1185 = vmatmul.msk.bf16.gmra.mxu0 %vm488_vm2, %v1206_v12  ;;  %1189 = vmatmul.msk.bf16.gmra.mxu1 %vm488_vm2, %v1210_v13 }
  0x32   : > { %1193 = vmatmul.msk.bf16.gmra.mxu2 %vm488_vm2, %v1214_v14  ;;  %1197 = vmatmul.msk.bf16.gmra.mxu3 %vm488_vm2, %v1218_v15 }
  0x41   : > { %1186 = vmatmul.msk.bf16.gmra.mxu0 %vm488_vm2, %v1207_v16  ;;  %1190 = vmatmul.msk.bf16.gmra.mxu1 %vm488_vm2, %v1211_v17 }
  0x42   : > { %1194 = vmatmul.msk.bf16.gmra.mxu2 %vm488_vm2, %v1215_v18  ;;  %1198 = vmatmul.msk.bf16.gmra.mxu3 %vm488_vm2, %v1219_v19 }
  0x51   : > { %1187 = vmatmul.msk.bf16.gmra.mxu0 %vm488_vm2, %v1208_v20  ;;  %1191 = vmatmul.msk.bf16.gmra.mxu1 %vm488_vm2, %v1212_v21 }
  0x52   : > { %1195 = vmatmul.msk.bf16.gmra.mxu2 %vm488_vm2, %v1216_v22  ;;  %1199 = vmatmul.msk.bf16.gmra.mxu3 %vm488_vm2, %v1220_v23 }
  0x9e   : > { %v553_v25 = vpop.f32.mrf.mxu0  ;;  %v573_v26 = vpop.f32.mrf.mxu1 }
  0x9f   : > { %v736_v27 = vmul.f32 %v1598_v24, %v553_v25  ;;  %v744_v29 = vmul.f32 %v1598_v24, %v573_v26 }
  0xa1   : > { %v772_v30 = vadd.f32 %v1604_v28, %v736_v27  ;;  %v780_v31 = vadd.f32 %v1604_v28, %v744_v29 }
  0xa3   : > { %v836_v40 = vmul.f32 0.1, %v772_v30  ;;  %v844_v41 = vmul.f32 0.1, %v780_v31  ;;  %vm804_vm3 = vcmp.ge.f32.partialorder %v772_v30, 0.0  ;;  %vm812_vm4 = vcmp.ge.f32.partialorder %v780_v31, 0.0 }
  0xa5   : > { %v593_v32 = vpop.f32.mrf.mxu2  ;;  %v613_v33 = vpop.f32.mrf.mxu3  ;;  %v868_v48 = vsel %vm804_vm3, %v772_v30, %v836_v40  ;;  %v876_v49 = vsel %vm812_vm4, %v780_v31, %v844_v41 }
  0xa6   : > { %v555_v34 = vpop.f32.mrf.mxu0  ;;  %v575_v35 = vpop.f32.mrf.mxu1  ;;  %v752_v38 = vmul.f32 %v1598_v24, %v593_v32  ;;  %v760_v39 = vmul.f32 %v1598_v24, %v613_v33 }
  0xa7   : > { %v737_v36 = vmul.f32 %v1598_v24, %v555_v34  ;;  %v745_v37 = vmul.f32 %v1598_v24, %v575_v35 }
  0xa8   : > { %v788_v46 = vadd.f32 %v1604_v28, %v752_v38  ;;  %v796_v47 = vadd.f32 %v1604_v28, %v760_v39 }
  0xa9   : > { %v773_v42 = vadd.f32 %v1604_v28, %v737_v36  ;;  %v781_v43 = vadd.f32 %v1604_v28, %v745_v37 }
  0xaa   : > { %v852_v60 = vmul.f32 0.1, %v788_v46  ;;  %v860_v61 = vmul.f32 0.1, %v796_v47  ;;  %vm820_vm7 = vcmp.ge.f32.partialorder %v788_v46, 0.0  ;;  %vm828_vm8 = vcmp.ge.f32.partialorder %v796_v47, 0.0 }
  0xab   : > { %vm805_vm5 = vcmp.ge.f32.partialorder %v773_v42, 0.0  ;;  %v837_v44 = vmul.f32 0.1, %v773_v42  ;;  %vm813_vm6 = vcmp.ge.f32.partialorder %v781_v43, 0.0  ;;  %v845_v45 = vmul.f32 0.1, %v781_v43 }
  0xac   : > { %v884_v4 = vsel %vm820_vm7, %v788_v46, %v852_v60  ;;  %v892_v5 = vsel %vm828_vm8, %v796_v47, %v860_v61 }
  0xad   : > { %v869_v50 = vsel %vm805_vm5, %v773_v42, %v837_v44  ;;  %v877_v51 = vsel %vm813_vm6, %v781_v43, %v845_v45  ;;  %v595_v52 = vpop.f32.mrf.mxu2  ;;  %v615_v53 = vpop.f32.mrf.mxu3 }
  0xae   : > { %v1227_v54 = vpack.c.bf16 %v869_v50, %v868_v48  ;;  %v1247_v55 = vpack.c.bf16 %v877_v51, %v876_v49  ;;  %v753_v56 = vmul.f32 %v1598_v24, %v595_v52  ;;  %v761_v57 = vmul.f32 %v1598_v24, %v615_v53  ;;  %v558_v58 = vpop.f32.mrf.mxu0  ;;  %v578_v59 = vpop.f32.mrf.mxu1 }
  0xaf   : > { %v738_v0 = vmul.f32 %v1598_v24, %v558_v58  ;;  %v746_v1 = vmul.f32 %v1598_v24, %v578_v59 }
  0xb0   : > { %1228 = vst [vmem:[%s1622_s30] sm:$0xff] %v1227_v54   ;;  %v789_v62 = vadd.f32 %v1604_v28, %v753_v56  ;;  %v797_v63 = vadd.f32 %v1604_v28, %v761_v57 }
  0xb1   : > { %1307 = vst [vmem:[%s1622_s30 + $0x20] sm:$0xff] %v1247_v55   ;;  %v774_v10 = vadd.f32 %v1604_v28, %v738_v0  ;;  %v782_v11 = vadd.f32 %v1604_v28, %v746_v1 }
  0xb2   : > { %vm821_vm9 = vcmp.ge.f32.partialorder %v789_v62, 0.0  ;;  %v853_v2 = vmul.f32 0.1, %v789_v62  ;;  %vm829_vm10 = vcmp.ge.f32.partialorder %v797_v63, 0.0  ;;  %v861_v3 = vmul.f32 0.1, %v797_v63 }
  0xb3   : > { %v838_v20 = vmul.f32 0.1, %v774_v10  ;;  %v846_v21 = vmul.f32 0.1, %v782_v11  ;;  %vm806_vm11 = vcmp.ge.f32.partialorder %v774_v10, 0.0  ;;  %vm814_vm12 = vcmp.ge.f32.partialorder %v782_v11, 0.0 }
  0xb4   : > { %v885_v6 = vsel %vm821_vm9, %v789_v62, %v853_v2  ;;  %v893_v7 = vsel %vm829_vm10, %v797_v63, %v861_v3 }
  0xb5   : > { %v1267_v8 = vpack.c.bf16 %v885_v6, %v884_v4  ;;  %v1287_v9 = vpack.c.bf16 %v893_v7, %v892_v5  ;;  %v598_v12 = vpop.f32.mrf.mxu2  ;;  %v618_v13 = vpop.f32.mrf.mxu3  ;;  %v870_v30 = vsel %vm806_vm11, %v774_v10, %v838_v20  ;;  %v878_v31 = vsel %vm814_vm12, %v782_v11, %v846_v21 }
  0xb6   : > { %v560_v14 = vpop.f32.mrf.mxu0  ;;  %v580_v15 = vpop.f32.mrf.mxu1  ;;  %v754_v18 = vmul.f32 %v1598_v24, %v598_v12  ;;  %v762_v19 = vmul.f32 %v1598_v24, %v618_v13 }
  0xb7   : > { %1311 = vst [vmem:[%s1622_s30 + $0x40] sm:$0xff] %v1267_v8   ;;  %v739_v16 = vmul.f32 %v1598_v24, %v560_v14  ;;  %v747_v17 = vmul.f32 %v1598_v24, %v580_v15 }
  0xb8   : > { %1315 = vst [vmem:[%s1622_s30 + $0x60] sm:$0xff] %v1287_v9   ;;  %v790_v27 = vadd.f32 %v1604_v28, %v754_v18  ;;  %v798_v29 = vadd.f32 %v1604_v28, %v762_v19 }
  0xb9   : > { %v775_v22 = vadd.f32 %v1604_v28, %v739_v16  ;;  %v783_v23 = vadd.f32 %v1604_v28, %v747_v17 }
  0xba   : > { %v854_v42 = vmul.f32 0.1, %v790_v27  ;;  %v862_v43 = vmul.f32 0.1, %v798_v29  ;;  %vm822_vm15 = vcmp.ge.f32.partialorder %v790_v27, 0.0  ;;  %vm830_vm0 = vcmp.ge.f32.partialorder %v798_v29, 0.0 }
  0xbb   : > { %vm807_vm13 = vcmp.ge.f32.partialorder %v775_v22, 0.0  ;;  %v839_v25 = vmul.f32 0.1, %v775_v22  ;;  %vm815_vm14 = vcmp.ge.f32.partialorder %v783_v23, 0.0  ;;  %v847_v26 = vmul.f32 0.1, %v783_v23 }
  0xbc   : > { %v886_v50 = vsel %vm822_vm15, %v790_v27, %v854_v42  ;;  %v894_v51 = vsel %vm830_vm0, %v798_v29, %v862_v43 }
  0xbd   : > { %v871_v32 = vsel %vm807_vm13, %v775_v22, %v839_v25  ;;  %v879_v33 = vsel %vm815_vm14, %v783_v23, %v847_v26  ;;  %v600_v34 = vpop.f32.mrf.mxu2  ;;  %v620_v35 = vpop.f32.mrf.mxu3 }
  0xbe   : > { %v1232_v36 = vpack.c.bf16 %v871_v32, %v870_v30  ;;  %v1252_v37 = vpack.c.bf16 %v879_v33, %v878_v31  ;;  %v755_v38 = vmul.f32 %v1598_v24, %v600_v34  ;;  %v763_v39 = vmul.f32 %v1598_v24, %v620_v35  ;;  %v563_v40 = vpop.f32.mrf.mxu0  ;;  %v583_v41 = vpop.f32.mrf.mxu1 }
  0xbf   : > { %v740_v46 = vmul.f32 %v1598_v24, %v563_v40  ;;  %v748_v47 = vmul.f32 %v1598_v24, %v583_v41 }
  0xc0   : > { %1304 = vst [vmem:[%s1622_s30 + $0x8] sm:$0xff] %v1232_v36   ;;  %v791_v44 = vadd.f32 %v1604_v28, %v755_v38  ;;  %v799_v45 = vadd.f32 %v1604_v28, %v763_v39 }
  0xc1   : > { %1308 = vst [vmem:[%s1622_s30 + $0x28] sm:$0xff] %v1252_v37   ;;  %v776_v56 = vadd.f32 %v1604_v28, %v740_v46  ;;  %v784_v57 = vadd.f32 %v1604_v28, %v748_v47 }
  0xc2   : > { %vm823_vm1 = vcmp.ge.f32.partialorder %v791_v44, 0.0  ;;  %v855_v48 = vmul.f32 0.1, %v791_v44  ;;  %vm831_vm2 = vcmp.ge.f32.partialorder %v799_v45, 0.0  ;;  %v863_v49 = vmul.f32 0.1, %v799_v45 }
  0xc3   : > { %v840_v2 = vmul.f32 0.1, %v776_v56  ;;  %v848_v3 = vmul.f32 0.1, %v784_v57  ;;  %vm808_vm3 = vcmp.ge.f32.partialorder %v776_v56, 0.0  ;;  %vm816_vm4 = vcmp.ge.f32.partialorder %v784_v57, 0.0 }
  0xc4   : > { %v887_v52 = vsel %vm823_vm1, %v791_v44, %v855_v48  ;;  %v895_v53 = vsel %vm831_vm2, %v799_v45, %v863_v49 }
  0xc5   : > { %v1272_v54 = vpack.c.bf16 %v887_v52, %v886_v50  ;;  %v1292_v55 = vpack.c.bf16 %v895_v53, %v894_v51  ;;  %v603_v58 = vpop.f32.mrf.mxu2  ;;  %v623_v59 = vpop.f32.mrf.mxu3  ;;  %v872_v10 = vsel %vm808_vm3, %v776_v56, %v840_v2  ;;  %v880_v11 = vsel %vm816_vm4, %v784_v57, %v848_v3 }
  0xc6   : > { %v565_v60 = vpop.f32.mrf.mxu0  ;;  %v585_v61 = vpop.f32.mrf.mxu1  ;;  %v756_v0 = vmul.f32 %v1598_v24, %v603_v58  ;;  %v764_v1 = vmul.f32 %v1598_v24, %v623_v59 }
  0xc7   : > { %1312 = vst [vmem:[%s1622_s30 + $0x48] sm:$0xff] %v1272_v54   ;;  %v741_v62 = vmul.f32 %v1598_v24, %v565_v60  ;;  %v749_v63 = vmul.f32 %v1598_v24, %v585_v61 }
  0xc8   : > { %1316 = vst [vmem:[%s1622_s30 + $0x68] sm:$0xff] %v1292_v55   ;;  %v792_v8 = vadd.f32 %v1604_v28, %v756_v0  ;;  %v800_v9 = vadd.f32 %v1604_v28, %v764_v1 }
  0xc9   : > { %v777_v4 = vadd.f32 %v1604_v28, %v741_v62  ;;  %v785_v5 = vadd.f32 %v1604_v28, %v749_v63 }
  0xca   : > { %v856_v22 = vmul.f32 0.1, %v792_v8  ;;  %v864_v23 = vmul.f32 0.1, %v800_v9  ;;  %vm824_vm7 = vcmp.ge.f32.partialorder %v792_v8, 0.0  ;;  %vm832_vm8 = vcmp.ge.f32.partialorder %v800_v9, 0.0 }
  0xcb   : > { %vm809_vm5 = vcmp.ge.f32.partialorder %v777_v4, 0.0  ;;  %v841_v6 = vmul.f32 0.1, %v777_v4  ;;  %vm817_vm6 = vcmp.ge.f32.partialorder %v785_v5, 0.0  ;;  %v849_v7 = vmul.f32 0.1, %v785_v5 }
  0xcc   : > { %v888_v32 = vsel %vm824_vm7, %v792_v8, %v856_v22  ;;  %v896_v33 = vsel %vm832_vm8, %v800_v9, %v864_v23 }
  0xcd   : > { %v873_v12 = vsel %vm809_vm5, %v777_v4, %v841_v6  ;;  %v881_v13 = vsel %vm817_vm6, %v785_v5, %v849_v7  ;;  %v605_v14 = vpop.f32.mrf.mxu2  ;;  %v625_v15 = vpop.f32.mrf.mxu3 }
  0xce   : > { %v1237_v16 = vpack.c.bf16 %v873_v12, %v872_v10  ;;  %v1257_v17 = vpack.c.bf16 %v881_v13, %v880_v11  ;;  %v757_v18 = vmul.f32 %v1598_v24, %v605_v14  ;;  %v765_v19 = vmul.f32 %v1598_v24, %v625_v15  ;;  %v568_v20 = vpop.f32.mrf.mxu0  ;;  %v588_v21 = vpop.f32.mrf.mxu1 }
  0xcf   : > { %v742_v27 = vmul.f32 %v1598_v24, %v568_v20  ;;  %v750_v29 = vmul.f32 %v1598_v24, %v588_v21 }
  0xd0   : > { %1305 = vst [vmem:[%s1622_s30 + $0x10] sm:$0xff] %v1237_v16   ;;  %v793_v25 = vadd.f32 %v1604_v28, %v757_v18  ;;  %v801_v26 = vadd.f32 %v1604_v28, %v765_v19 }
  0xd1   : > { %1309 = vst [vmem:[%s1622_s30 + $0x30] sm:$0xff] %v1257_v17   ;;  %v778_v38 = vadd.f32 %v1604_v28, %v742_v27  ;;  %v786_v39 = vadd.f32 %v1604_v28, %v750_v29 }
  0xd2   : > { %vm825_vm9 = vcmp.ge.f32.partialorder %v793_v25, 0.0  ;;  %v857_v30 = vmul.f32 0.1, %v793_v25  ;;  %vm833_vm10 = vcmp.ge.f32.partialorder %v801_v26, 0.0  ;;  %v865_v31 = vmul.f32 0.1, %v801_v26 }
  0xd3   : > { %v842_v48 = vmul.f32 0.1, %v778_v38  ;;  %v850_v49 = vmul.f32 0.1, %v786_v39  ;;  %vm810_vm11 = vcmp.ge.f32.partialorder %v778_v38, 0.0  ;;  %vm818_vm12 = vcmp.ge.f32.partialorder %v786_v39, 0.0 }
  0xd4   : > { %v889_v34 = vsel %vm825_vm9, %v793_v25, %v857_v30  ;;  %v897_v35 = vsel %vm833_vm10, %v801_v26, %v865_v31 }
  0xd5   : > { %v1277_v36 = vpack.c.bf16 %v889_v34, %v888_v32  ;;  %v1297_v37 = vpack.c.bf16 %v897_v35, %v896_v33  ;;  %v608_v40 = vpop.f32.mrf.mxu2  ;;  %v628_v41 = vpop.f32.mrf.mxu3  ;;  %v874_v56 = vsel %vm810_vm11, %v778_v38, %v842_v48  ;;  %v882_v57 = vsel %vm818_vm12, %v786_v39, %v850_v49 }
  0xd6   : > { %v570_v42 = vpop.f32.mrf.mxu0  ;;  %v590_v43 = vpop.f32.mrf.mxu1  ;;  %v758_v46 = vmul.f32 %v1598_v24, %v608_v40  ;;  %v766_v47 = vmul.f32 %v1598_v24, %v628_v41 }
  0xd7   : > { %1313 = vst [vmem:[%s1622_s30 + $0x50] sm:$0xff] %v1277_v36   ;;  %v743_v44 = vmul.f32 %v1598_v24, %v570_v42  ;;  %v751_v45 = vmul.f32 %v1598_v24, %v590_v43 }
  0xd8   : > { %1317 = vst [vmem:[%s1622_s30 + $0x70] sm:$0xff] %v1297_v37   ;;  %v794_v54 = vadd.f32 %v1604_v28, %v758_v46  ;;  %v802_v55 = vadd.f32 %v1604_v28, %v766_v47 }
  0xd9   : > { %v779_v50 = vadd.f32 %v1604_v28, %v743_v44  ;;  %v787_v51 = vadd.f32 %v1604_v28, %v751_v45 }
  0xda   : > { %v858_v2 = vmul.f32 0.1, %v794_v54  ;;  %v866_v3 = vmul.f32 0.1, %v802_v55  ;;  %vm826_vm15 = vcmp.ge.f32.partialorder %v794_v54, 0.0  ;;  %vm834_vm0 = vcmp.ge.f32.partialorder %v802_v55, 0.0 }
  0xdb   : > { %vm811_vm13 = vcmp.ge.f32.partialorder %v779_v50, 0.0  ;;  %v843_v52 = vmul.f32 0.1, %v779_v50  ;;  %vm819_vm14 = vcmp.ge.f32.partialorder %v787_v51, 0.0  ;;  %v851_v53 = vmul.f32 0.1, %v787_v51 }
  0xdc   : > { %v890_v7 = vsel %vm826_vm15, %v794_v54, %v858_v2  ;;  %v898_v8 = vsel %vm834_vm0, %v802_v55, %v866_v3 }
  0xdd   : > { %v875_v58 = vsel %vm811_vm13, %v779_v50, %v843_v52  ;;  %v883_v59 = vsel %vm819_vm14, %v787_v51, %v851_v53  ;;  %v610_v60 = vpop.f32.mrf.mxu2  ;;  %v630_v61 = vpop.f32.mrf.mxu3 }
  0xde   : > { %v1242_v62 = vpack.c.bf16 %v875_v58, %v874_v56  ;;  %v1262_v63 = vpack.c.bf16 %v883_v59, %v882_v57  ;;  %v759_v0 = vmul.f32 %v1598_v24, %v610_v60  ;;  %v767_v1 = vmul.f32 %v1598_v24, %v630_v61 }
  0xe0   : > { %1306 = vst [vmem:[%s1622_s30 + $0x18] sm:$0xff] %v1242_v62   ;;  %v795_v4 = vadd.f32 %v1604_v28, %v759_v0  ;;  %v803_v5 = vadd.f32 %v1604_v28, %v767_v1 }
  0xe1   : > { %1310 = vst [vmem:[%s1622_s30 + $0x38] sm:$0xff] %v1262_v63  }
  0xe2   : > { %vm827_vm1 = vcmp.ge.f32.partialorder %v795_v4, 0.0  ;;  %v859_v24 = vmul.f32 0.1, %v795_v4  ;;  %vm835_vm2 = vcmp.ge.f32.partialorder %v803_v5, 0.0  ;;  %v867_v6 = vmul.f32 0.1, %v803_v5 }
  0xe4   : > { %v891_v9 = vsel %vm827_vm1, %v795_v4, %v859_v24  ;;  %v899_v10 = vsel %vm835_vm2, %v803_v5, %v867_v6 }
  0xe5   : > { %v1282_v11 = vpack.c.bf16 %v891_v9, %v890_v7  ;;  %v1302_v12 = vpack.c.bf16 %v899_v10, %v898_v8 }
  0xe7   : > { %1314 = vst [vmem:[%s1622_s30 + $0x58] sm:$0xff] %v1282_v11  }
  0xe8   : > { %1318 = vst [vmem:[%s1622_s30 + $0x78] sm:$0xff] %v1302_v12  }
  0xe9   : > { %1412 = shalt.err (!%p1409_p5)
}
  0xea   : > { %s1466_s26 = smov 64   ;;  %s1467_s29 = smov 4  }
  0xeb   : > { %1325 = dma.vmem_to_hbm [thread:$0]  (%p1533_p4), %s979_s8, 2048, %s981_s9, %s965_s10, %s1466_s26, %s1466_s26, %s1467_s29  }
  0xec PF: > { %p1331_p6 = scmp.ge.s32.totalorder %s1463_s20, 2  ;;  %s995_s30 = sand.u32 1, %s1443_s15  }
  0xed   : > { %s996_s5 = scalar_lea.sflag [#allocation4], %s995_s30 }
  0xee   : > { %p1328_p7 = pnand %p1331_p6, %p1540_p8 }
  0xf0   : > { %p1329_p9 = pneg %p1328_p7 }
  0xf2   : > { %1438 = dma.done.wait (%p1329_p9), %s996_s5, 2048  }
  0xf3   : > { %1440 = vsyncadd (%p1329_p9), %s996_s5, 4294965248  ;;  %s17_s20 = sadd.s32 1, %s1463_s20   ;;  %s1736_s15 = smov %s1447_s16 }
  0xf4   : > { %p14_p10 = scmp.ge.s32.totalorder %s17_s20, 10   ;;  %s1737_s16 = smov %s1451_s17 }
  0xf5   : > { %s1738_s17 = smov %s1546_s28  ;;  %s1739_s18 = smov %s1459_s19 }
  0xf6   : > { %s1740_s19 = smov %s1742_s23  ;;  %16 = sbr.rel (!%p14_p10) target bundleno = 4 (0x4), region = 88 }
  0xfb   :  { %1002 = vsyncpa [#allocation4], 1 }
  0xfc   :  { %1004 = vsyncpa [#allocation4 + $0x1], 1 }

</bundles_post_ra>
